<compile_context>
chip_gen: v5e
topology: v5e:2x2
jax: 0.10.0
libtpu: 0.0.40
codegen_flags: <defaults>
</compile_context>

<pallas_src>
import jax
import jax.numpy as jnp
from jax.experimental import pallas as pl
from jax.experimental.pallas import tpu as pltpu


_LANE = 128           # TPU vreg lane width
_MAX_TILE_ROWS = 512  # dense rows per grid step (>=512 -> ~85% HBM roofline)


def _pos_emb_kernel(node_ref, lm_ref, out_ref):
    # node_ref: (TB, ROW_LANES) node coords replicated to the landmark-lane
    #           layout (the replication is fused into the input DMA).
    # lm_ref:   (1, ROW_LANES)  landmark pattern, broadcast over sublanes.
    # out_ref:  (TB, ROW_LANES) |node - landmarks|, lane-dense.
    out_ref[...] = jnp.abs(node_ref[...] - lm_ref[...])


def _round_up(x, m):
    return (x + m - 1) // m * m


def _pos_emb_pallas(node2, landmarks):
    """Batched |node - landmarks| via Pallas. node2: (B, C), landmarks: (L, C)."""
    B, C = node2.shape
    L, _ = landmarks.shape
    lc = L * C

    # Pack GROUP batch rows per dense row so the kernel's last dim is either a
    # multiple of 128 (lane-dense) or the full L*C extent (legal fallback).
    group = _LANE // lc if _LANE % lc == 0 else 1
    row_lanes = group * lc

    m_rows = pl.cdiv(B, group)                  # dense rows needed
    if m_rows <= _MAX_TILE_ROWS:
        tile_rows, m_pad = m_rows, m_rows       # single block == full extent
    else:
        tile_rows = _MAX_TILE_ROWS              # multiple of 8
        m_pad = _round_up(m_rows, tile_rows)
    b_pad = m_pad * group

    # Wrapper-side layout plumbing (reshapes are free; the tile/broadcast is
    # fused into the Pallas input DMA via allow_input_fusion below).
    node_p = jnp.pad(node2, ((0, b_pad - B), (0, 0)))            # (b_pad, C)
    node_rep = jnp.tile(node_p, (1, L)).reshape(m_pad, row_lanes)
    lm_row = jnp.tile(landmarks.reshape(1, lc), (1, group))      # (1, row_lanes)

    out_dense = pl.pallas_call(
        _pos_emb_kernel,
        out_shape=jax.ShapeDtypeStruct((m_pad, row_lanes), jnp.float32),
        grid=(m_pad // tile_rows,),
        in_specs=[
            pl.BlockSpec((tile_rows, row_lanes), lambda i: (i, 0)),
            pl.BlockSpec((1, row_lanes), lambda i: (0, 0)),  # resident table
        ],
        out_specs=pl.BlockSpec((tile_rows, row_lanes), lambda i: (i, 0)),
        compiler_params=pltpu.CompilerParams(
            dimension_semantics=("parallel",),   # shards over v7x's 2 TCs
            allow_input_fusion=[True, False],    # fuse node tile into input DMA
        ),
    )(node_rep, lm_row)

    return out_dense.reshape(b_pad, L, C)[:B]


def pos_emb_forward(node, landmarks, *, use_pallas=None):
    """|node - landmarks| with numpy-style broadcasting.

    node:      (C,) or (1, C) -> returns (L, C)     (matches the PyTorch module)
               (B, C)         -> returns (B, L, C)  (batched extension)
    landmarks: (L, C)
    """
    landmarks = jnp.asarray(landmarks, jnp.float32)
    L, C = landmarks.shape
    node = jnp.asarray(node, jnp.float32)
    node2 = node.reshape(-1, C)                  # (B, C)
    B = node2.shape[0]

    if use_pallas is None:
        # A single 16-float query is pure launch/DMA overhead in any custom
        # kernel; let XLA fuse it.  Pallas serves the batched path.
        use_pallas = B >= 8

    if use_pallas:
        out = _pos_emb_pallas(node2, landmarks)                      # (B, L, C)
    else:
        out = jnp.abs(node2[:, None, :] - landmarks[None, :, :])     # (B, L, C)

    if B == 1:
        return out[0]                            # (L, C), as in the module
    return out


if __name__ == "__main__":
    key = jax.random.PRNGKey(0)
    k_node, k_lm, k_batch = jax.random.split(key, 3)

    # Deterministic synthetic "landmarks" (in place of ./data/landmark.npy):
    # 8 landmarks with 2-D coordinates.
    L, C = 8, 2
    landmarks = jax.random.uniform(k_lm, (L, C), dtype=jnp.float32) * 10.0

    # --- Module-exact path: single (1, C) node query -------------------------
    node = jax.random.uniform(k_node, (1, C), dtype=jnp.float32) * 10.0
    ref1 = jnp.sqrt((node - landmarks) ** 2)                    # reference
    out_fast = jax.block_until_ready(pos_emb_forward(node, landmarks))
    out_pallas1 = jax.block_until_ready(
        pos_emb_forward(node, landmarks, use_pallas=True))      # force the kernel
    assert out_fast.shape == (L, C) and out_pallas1.shape == (L, C)
    assert jnp.allclose(out_fast, ref1, atol=1e-6), "fast-path mismatch"
    assert jnp.allclose(out_pallas1, ref1, atol=1e-6), "pallas B=1 mismatch"

    # --- Batched path through the Pallas kernel ------------------------------
    B = 64
    nodes = jax.random.uniform(k_batch, (B, C), dtype=jnp.float32) * 10.0
    refb = jnp.abs(nodes[:, None, :] - landmarks[None, :, :])
    out_b = jax.block_until_ready(pos_emb_forward(nodes, landmarks))
    assert out_b.shape == (B, L, C)
    assert jnp.allclose(out_b, refb, atol=1e-6), "pallas batched mismatch"

    print("KERNEL_OK")
</pallas_src>

<mosaic_0001>
module attributes {stable_mosaic.version = 11 : i64} {
  func.func @_pos_emb_kernel(%arg0: i32, %arg1: memref<1x128xf32, #tpu.memory_space<vmem>>, %arg2: memref<1x128xf32, #tpu.memory_space<vmem>>, %arg3: memref<1x128xf32, #tpu.memory_space<vmem>>) attributes {dimension_semantics = [#tpu.dimension_semantics<parallel>], iteration_bounds = array<i64: 1>, scalar_prefetch = 0 : i64, scratch_operands = 0 : i64, tpu.core_type = #tpu.core_type<tc>, window_params = [{transform_indices = @transform_0, window_bounds = array<i64: 1, 128>}, {pipeline_mode = #tpu.pipeline_mode<synchronous>, transform_indices = @transform_1, window_bounds = array<i64: 1, 128>}, {transform_indices = @transform_2, window_bounds = array<i64: 1, 128>}]} {
    %c0 = arith.constant 0 : index
    %c0_0 = arith.constant 0 : index
    %0 = vector.load %arg1[%c0, %c0_0] : memref<1x128xf32, #tpu.memory_space<vmem>>, vector<1x128xf32>
    %c0_1 = arith.constant 0 : index
    %c0_2 = arith.constant 0 : index
    %1 = vector.load %arg2[%c0_1, %c0_2] : memref<1x128xf32, #tpu.memory_space<vmem>>, vector<1x128xf32>
    %2 = arith.subf %0, %1 : vector<1x128xf32>
    %3 = math.absf %2 : vector<1x128xf32>
    %c0_3 = arith.constant 0 : index
    %c0_4 = arith.constant 0 : index
    %4 = vector.load %arg3[%c0_3, %c0_4] : memref<1x128xf32, #tpu.memory_space<vmem>>, vector<1x128xf32>
    tpu.vector_store %arg3[%c0_3, %c0_4], %3 {strides = array<i32>} : memref<1x128xf32, #tpu.memory_space<vmem>>, vector<1x128xf32>,
    return
  }
  func.func @transform_0(%arg0: i32) -> (i32, i32) {
    %c0_i32 = arith.constant 0 : i32
    %c0_i32_0 = arith.constant 0 : i32
    return %arg0, %c0_i32 : i32, i32
  }
  func.func @transform_1(%arg0: i32) -> (i32, i32) {
    %c0_i32 = arith.constant 0 : i32
    %c0_i32_0 = arith.constant 0 : i32
    %c0_i32_1 = arith.constant 0 : i32
    return %c0_i32, %c0_i32_0 : i32, i32
  }
  func.func @transform_2(%arg0: i32) -> (i32, i32) {
    %c0_i32 = arith.constant 0 : i32
    %c0_i32_0 = arith.constant 0 : i32
    return %arg0, %c0_i32 : i32, i32
  }
}

</mosaic_0001>

<bundles_post_ra>
// kernel: tpu_custom_call.1
= control target key start
LH: loop header
LB: loop body
LE: loop exit
PB: predicated region body
PF: predicated region fallthrough
CT: control target
= control target key end

     0   :  { %7 = vsyncpa [#allocation3], 0  ;;  %s171_s0 = inlined_call_operand.hbm [shape: f32[1,128], index: 0, kind: input, shape index: {}]   ;;  %s172_s1 = inlined_call_operand.hbm [shape: f32[1,128], index: 1, kind: input, shape index: {}]   ;;  %s173_s2 = inlined_call_operand.hbm [shape: f32[1,128], index: 2, kind: output, shape index: {}]  }
   0x1   :  { %8 = vsyncpa [#allocation6], 0 }
   0x2   :  { %9 = vsyncpa [#allocation4], 0  ;;  %s15_s11 = sshll.u32 %s171_s0, 4  ;;  %s144_s12 = smov [#allocation2]   ;;  %s16_s11 = int_to_ptr.hbm [resolvable:$true] %s15_s11 }
   0x3   :  { %s17_s13 = sshll.u32 %s144_s12, 4  ;;  %s26_s16 = sshll.u32 %s172_s1, 4  ;;  %s18_s13 = int_to_ptr.vmem [resolvable:$true] %s17_s13  ;;  %s27_s16 = int_to_ptr.hbm [resolvable:$true] %s26_s16 }
   0x4   :  { %20 = dma.hbm_to_vmem [thread:$0]  %s16_s11, 16, %s18_s13, [#allocation3]  }
   0x5   :  { %s145_s17 = smov [#allocation5]  }
   0x6   :  { %s28_s18 = sshll.u32 %s145_s17, 4  ;;  %s29_s18 = int_to_ptr.vmem [resolvable:$true] %s28_s18 }
   0x7   :  { %31 = dma.hbm_to_vmem [thread:$0]  %s27_s16, 16, %s29_s18, [#allocation6]  }
   0x8   :  { %138 = dma.done.wait [#allocation3], 16  }
   0x9   :  { %139 = vsyncadd [#allocation3], 4294967280 }
   0xa   :  { %140 = dma.done.wait [#allocation6], 16  }
   0xb   :  { %141 = vsyncadd [#allocation6], 4294967280  ;;  %v40_v0 = vld [vmem:[#allocation2] sm:$0x1]  ;;  %v41_v1 = vld [vmem:[#allocation5] sm:$0x1] }
   0xc   :  { %s146_s0 = smov [#allocation7]   ;;  %s52_s22 = sshll.u32 %s173_s2, 4  ;;  %v42_v2 = vsub.f32 %v40_v0, %v41_v1  ;;  %s53_s22 = int_to_ptr.hbm [resolvable:$true] %s52_s22 }
   0xd   :  { %s50_s19 = sshll.u32 %s146_s0, 4  ;;  %s51_s19 = int_to_ptr.vmem [resolvable:$true] %s50_s19 }
   0xe   :  { %v43_v3 = vand.u32 2147483647, %v42_v2 }
  0x10   :  { %44 = vst [vmem:[#allocation7] sm:$0x1] %v43_v3 }
  0x11   :  { %55 = dma.vmem_to_hbm [thread:$0]  %s51_s19, 16, %s53_s22, [#allocation4]  }
  0x12   :  { %142 = dma.done.wait [#allocation4], 16  }
  0x13   :  { %143 = vsyncadd [#allocation4], 4294967280 }
  0x14   :  { %60 = vsyncpa [#allocation3], 1 }
  0x15   :  { %61 = vsyncpa [#allocation6], 1 }
  0x16   :  { %62 = vsyncpa [#allocation4], 1 }

</bundles_post_ra>
